<compile_context>
chip_gen: v7x
topology: tpu7x:2x2x1
jax: 0.10.0
libtpu: 0.0.40
codegen_flags: <defaults>
</compile_context>

<pallas_src>
import functools
import re

import jax
import jax.numpy as jnp
from jax.experimental import pallas as pl
from jax.experimental.pallas import tpu as pltpu


# ---------------------------------------------------------------------------
# Host-side chip detection (cached; feeds only *static* kernel choices).
# ---------------------------------------------------------------------------
@functools.lru_cache(maxsize=None)
def _tpu_chip_info():
    """Returns (generation, tensorcores_per_chip, vmem_capacity_bytes)."""
    gen = 5                                      # conservative default -> f32 act path
    try:
        kind = jax.devices()[0].device_kind      # "TPU v5 lite", "TPU v6e", "TPU7x", ...
        m = re.search(r"(\d+)", kind)
        if m:
            gen = int(m.group(1))
    except Exception:
        pass
    num_cores = 2 if gen >= 7 else 1             # v7x: 2 TensorCores per chip
    vmem_cap = (64 if gen >= 7 else 128) * 1024 * 1024
    try:
        info = pltpu.get_tpu_info()
        vmem_cap = int(getattr(info, "vmem_capacity_bytes", vmem_cap))
    except Exception:
        pass
    return gen, num_cores, vmem_cap


def default_act_dtype():
    """bf16 bias-add/tanh on v6e/v7x (EUP is the binding unit); f32 on v5e."""
    gen, _, _ = _tpu_chip_info()
    return jnp.bfloat16 if gen >= 6 else jnp.float32


# ---------------------------------------------------------------------------
# Kernel
# ---------------------------------------------------------------------------
def _critic_kernel(x_ref, w1_ref, b1_ref, w2_ref, b2_ref, w3_ref, b3_ref,
                   wv_ref, bv_ref, v_ref, *, act_dtype):
    """One batch tile of the fused 4-layer critic MLP.

    x_ref:  [bb, in]   f32
    w*_ref: [*, h]     bf16       (MXU operands, resident / single-buffered)
    b*_ref: [1, h]     act_dtype  (bf16 on v6e/v7x, f32 on v5e)
    wv_ref: [1, h]     f32        (value head row vector, used on the VPU)
    bv_ref: [1, 1]     f32
    v_ref:  [bb, 1]    f32
    """
    def layer(h_bf16, w_ref, b_ref):
        acc = jnp.dot(h_bf16, w_ref[...], preferred_element_type=jnp.float32)
        # Bias-add + tanh in act_dtype: bf16 on v6e/v7x halves EUP pushes and
        # the [bb, h] intermediate traffic; v5e stays f32 (no bf16 VPU/EUP).
        return jnp.tanh(acc.astype(act_dtype) + b_ref[...])

    h = layer(x_ref[...].astype(jnp.bfloat16), w1_ref, b1_ref)
    h = layer(h.astype(jnp.bfloat16), w2_ref, b2_ref)
    h = layer(h.astype(jnp.bfloat16), w3_ref, b3_ref)

    # Value head: [bb, h] @ [h, 1] would use 1 of 128/256 MXU columns, so do a
    # VPU multiply + XLU lane reduction instead (both units have slack here).
    v = jnp.sum(h.astype(jnp.float32) * wv_ref[...], axis=-1, keepdims=True)
    v_ref[...] = (v + bv_ref[...]).astype(v_ref.dtype)


# ---------------------------------------------------------------------------
# Tiling policy
# ---------------------------------------------------------------------------
def _pick_batch_tile(batch, block_b, num_cores):
    """Generation-aware batch tile.

    v5e/v6e (1 TC): biggest tile that fits; never shrink just to add grid steps.
    v7x (2 TCs):    even grid step count with balanced >=256-row tiles when the
                    batch allows, so neither TensorCore idles a full step.
    """
    bb = min(block_b, batch)
    if num_cores >= 2 and batch >= 512:
        steps = 2 * max(1, -(-batch // (2 * block_b)))   # smallest even step count
        bb = -(-batch // steps)                          # balanced tile size
    if bb < batch and bb % 8:
        bb = ((bb + 7) // 8) * 8                         # keep sublane divisibility
        if bb >= batch:
            bb = batch
    return bb


# ---------------------------------------------------------------------------
# Forward
# ---------------------------------------------------------------------------
@functools.partial(jax.jit,
                   static_argnames=("block_b", "num_cores", "vmem_cap_bytes"))
def _critic_forward_impl(state, w1b, b1, w2b, b2, w3b, b3, wv_row, bv_row, *,
                         block_b, num_cores, vmem_cap_bytes):
    B, input_dims = state.shape
    hidden = w1b.shape[1]
    act_dtype = b1.dtype

    bb = _pick_batch_tile(B, block_b, num_cores)
    grid = (pl.cdiv(B, bb),)

    x_spec = pl.BlockSpec((bb, input_dims), lambda i: (i, 0))
    out_spec = pl.BlockSpec((bb, 1), lambda i: (i, 0))

    def resident(arr):
        # Grid-invariant operand: single resident VMEM buffer (no double
        # buffering). Matters on v7x (64 MiB/TC) at production hidden dims.
        nd = arr.ndim
        return pl.BlockSpec(arr.shape, lambda i: (0,) * nd,
                            pipeline_mode=pl.Buffered(1))

    # NOTE: for hidden >= ~1.5-2k on v7x (>= ~3-4k on v5e/v6e) switch w2/w3 to
    # K-tiled BlockSpecs with an f32 VMEM accumulator instead of fully-resident
    # weights.  Not needed at the module's default hidden_dims=512.

    bytes_weights = (w1b.size + w2b.size + w3b.size) * 2          # bf16, 1 buffer each
    bytes_bias = ((b1.size + b2.size + b3.size) * b1.dtype.itemsize
                  + (wv_row.size + bv_row.size) * 4)
    bytes_io = 2 * 4 * bb * (input_dims + 1)                      # x / v, double-buffered
    bytes_inter = 6 * 4 * bb * hidden                             # f32 temporaries
    vmem_bytes = bytes_weights + bytes_bias + bytes_io + bytes_inter + (2 << 20)
    vmem_limit = max(4 << 20, min(int(vmem_bytes), int(0.6 * vmem_cap_bytes)))

    cost = pl.CostEstimate(
        flops=2 * B * (input_dims * hidden + 2 * hidden * hidden + hidden),
        transcendentals=3 * B * hidden,
        bytes_accessed=int(4 * state.size + 4 * B + bytes_weights + bytes_bias))

    kernel = functools.partial(_critic_kernel, act_dtype=act_dtype)

    return pl.pallas_call(
        kernel,
        out_shape=jax.ShapeDtypeStruct((B, 1), jnp.float32),
        grid=grid,
        in_specs=[
            x_spec,
            resident(w1b), resident(b1),
            resident(w2b), resident(b2),
            resident(w3b), resident(b3),
            resident(wv_row), resident(bv_row),
        ],
        out_specs=out_spec,
        compiler_params=pltpu.CompilerParams(
            dimension_semantics=("parallel",),
            vmem_limit_bytes=vmem_limit),
        cost_estimate=cost,
    )(state, w1b, b1, w2b, b2, w3b, b3, wv_row, bv_row)


def critic_forward(state, kernel_params, block_b=512):
    """state: [B, input_dims] f32 -> value: [B, 1] f32.

    `kernel_params` must come from prepare_params() so the bf16 weight copies
    already exist and no per-call casts run in front of the kernel.
    """
    _, num_cores, vmem_cap = _tpu_chip_info()
    return _critic_forward_impl(state, *kernel_params, block_b=block_b,
                                num_cores=num_cores, vmem_cap_bytes=vmem_cap)


# ---------------------------------------------------------------------------
# Parameters
# ---------------------------------------------------------------------------
def init_params(key, input_dims, hidden_dims):
    """nn.Linear-style init (uniform(+-1/sqrt(fan_in))); weights stored [in, out]."""
    def linear(k, fan_in, fan_out):
        kw, kb = jax.random.split(k)
        bound = 1.0 / jnp.sqrt(fan_in)
        w = jax.random.uniform(kw, (fan_in, fan_out), jnp.float32, -bound, bound)
        b = jax.random.uniform(kb, (1, fan_out), jnp.float32, -bound, bound)
        return w, b

    k1, k2, k3, k4 = jax.random.split(key, 4)
    w1, b1 = linear(k1, input_dims, hidden_dims)
    w2, b2 = linear(k2, hidden_dims, hidden_dims)
    w3, b3 = linear(k3, hidden_dims, hidden_dims)
    wv, bv = linear(k4, hidden_dims, 1)
    return (w1, b1, w2, b2, w3, b3, wv, bv)


def prepare_params(params, act_dtype=None):
    """One-time conversion to the kernel's operand layout / dtypes.

    Hoists the f32->bf16 casts out of the per-call forward: call once at init
    (and after every optimizer step), then reuse the result for every forward.
    """
    if act_dtype is None:
        act_dtype = default_act_dtype()
    w1, b1, w2, b2, w3, b3, wv, bv = params
    hidden = w1.shape[1]
    return (
        w1.astype(jnp.bfloat16), b1.reshape(1, hidden).astype(act_dtype),
        w2.astype(jnp.bfloat16), b2.reshape(1, hidden).astype(act_dtype),
        w3.astype(jnp.bfloat16), b3.reshape(1, hidden).astype(act_dtype),
        wv.reshape(1, hidden).astype(jnp.float32),
        bv.reshape(1, 1).astype(jnp.float32),
    )


def reference_forward(state, params, act_dtype=jnp.float32):
    """Pure-JAX reference using the identical dtype recipe as the kernel."""
    w1, b1, w2, b2, w3, b3, wv, bv = params

    def layer(x, w, b):
        acc = jnp.dot(x.astype(jnp.bfloat16), w.astype(jnp.bfloat16),
                      preferred_element_type=jnp.float32)
        return jnp.tanh(acc.astype(act_dtype) + b.reshape(1, -1).astype(act_dtype))

    h = layer(state, w1, b1)
    h = layer(h, w2, b2)
    h = layer(h, w3, b3)
    return (jnp.sum(h.astype(jnp.float32) * wv.reshape(1, -1),
                    axis=-1, keepdims=True) + bv.reshape(1, 1))


# TODO(synk): the PyTorch module's Adam optimizer / device placement are
# training-host plumbing, not part of the forward pass, and are not ported.

if __name__ == "__main__":
    key = jax.random.PRNGKey(0)
    k_param, k_state = jax.random.split(key)

    batch = 256            # small demo shapes; the module default is hidden_dims=512
    input_dims = 16
    hidden_dims = 128

    params = init_params(k_param, input_dims, hidden_dims)    # f32 masters
    kparams = prepare_params(params)                          # bf16 once, reused per call
    state = jax.random.normal(k_state, (batch, input_dims), jnp.float32)

    v = jax.block_until_ready(critic_forward(state, kparams))
    assert v.shape == (batch, 1)

    v_ref = reference_forward(state, params, act_dtype=default_act_dtype())
    err = float(jnp.max(jnp.abs(v - v_ref)))
    assert jnp.allclose(v, v_ref, atol=5e-3, rtol=5e-3), f"max err {err}"

    print("KERNEL_OK")
</pallas_src>

<mosaic_0001>
module attributes {stable_mosaic.version = 11 : i64} {
  func.func @_critic_kernel(%arg0: i32, %arg1: memref<256x16xf32, #tpu.memory_space<vmem>>, %arg2: memref<16x128xbf16, #tpu.memory_space<vmem>>, %arg3: memref<1x128xf32, #tpu.memory_space<vmem>>, %arg4: memref<128x128xbf16, #tpu.memory_space<vmem>>, %arg5: memref<1x128xf32, #tpu.memory_space<vmem>>, %arg6: memref<128x128xbf16, #tpu.memory_space<vmem>>, %arg7: memref<1x128xf32, #tpu.memory_space<vmem>>, %arg8: memref<1x128xf32, #tpu.memory_space<vmem>>, %arg9: memref<1x1xf32, #tpu.memory_space<vmem>>, %arg10: memref<256x1xf32, #tpu.memory_space<vmem>>) attributes {dimension_semantics = [#tpu.dimension_semantics<parallel>], iteration_bounds = array<i64: 1>, scalar_prefetch = 0 : i64, scratch_operands = 0 : i64, tpu.core_type = #tpu.core_type<tc>, window_params = [{transform_indices = @transform_0, window_bounds = array<i64: 256, 16>}, {pipeline_mode = #tpu.pipeline_mode<synchronous>, transform_indices = @transform_1, window_bounds = array<i64: 16, 128>}, {pipeline_mode = #tpu.pipeline_mode<synchronous>, transform_indices = @transform_2, window_bounds = array<i64: 1, 128>}, {pipeline_mode = #tpu.pipeline_mode<synchronous>, transform_indices = @transform_3, window_bounds = array<i64: 128, 128>}, {pipeline_mode = #tpu.pipeline_mode<synchronous>, transform_indices = @transform_4, window_bounds = array<i64: 1, 128>}, {pipeline_mode = #tpu.pipeline_mode<synchronous>, transform_indices = @transform_5, window_bounds = array<i64: 128, 128>}, {pipeline_mode = #tpu.pipeline_mode<synchronous>, transform_indices = @transform_6, window_bounds = array<i64: 1, 128>}, {pipeline_mode = #tpu.pipeline_mode<synchronous>, transform_indices = @transform_7, window_bounds = array<i64: 1, 128>}, {pipeline_mode = #tpu.pipeline_mode<synchronous>, transform_indices = @transform_8, window_bounds = array<i64: 1, 1>}, {transform_indices = @transform_9, window_bounds = array<i64: 256, 1>}]} {
    %c0 = arith.constant 0 : index
    %c0_0 = arith.constant 0 : index
    %0 = vector.load %arg1[%c0, %c0_0] : memref<256x16xf32, #tpu.memory_space<vmem>>, vector<256x16xf32>
    %1 = arith.truncf %0 : vector<256x16xf32> to vector<256x16xbf16>
    %c0_1 = arith.constant 0 : index
    %c0_2 = arith.constant 0 : index
    %2 = vector.load %arg2[%c0_1, %c0_2] : memref<16x128xbf16, #tpu.memory_space<vmem>>, vector<16x128xbf16>
    %cst = arith.constant dense<0.000000e+00> : vector<256x128xf32>
    %3 = tpu.matmul %1, %2, %cst {dimension_numbers = #tpu.dot_dimension_numbers<[1], [0], [0], [1], [0, 0, 1, 1], [], []>} : vector<256x16xbf16>, vector<16x128xbf16>, vector<256x128xf32> -> vector<256x128xf32>
    %c0_3 = arith.constant 0 : index
    %c0_4 = arith.constant 0 : index
    %4 = vector.load %arg3[%c0_3, %c0_4] : memref<1x128xf32, #tpu.memory_space<vmem>>, vector<1x128xf32>
    %5 = vector.broadcast %4 : vector<1x128xf32> to vector<256x128xf32>
    %6 = arith.addf %3, %5 : vector<256x128xf32>
    %7 = math.tanh %6 : vector<256x128xf32>
    %8 = arith.truncf %7 : vector<256x128xf32> to vector<256x128xbf16>
    %c0_5 = arith.constant 0 : index
    %c0_6 = arith.constant 0 : index
    %9 = vector.load %arg4[%c0_5, %c0_6] : memref<128x128xbf16, #tpu.memory_space<vmem>>, vector<128x128xbf16>
    %cst_7 = arith.constant dense<0.000000e+00> : vector<256x128xf32>
    %10 = tpu.matmul %8, %9, %cst_7 {dimension_numbers = #tpu.dot_dimension_numbers<[1], [0], [0], [1], [0, 0, 1, 1], [], []>} : vector<256x128xbf16>, vector<128x128xbf16>, vector<256x128xf32> -> vector<256x128xf32>
    %c0_8 = arith.constant 0 : index
    %c0_9 = arith.constant 0 : index
    %11 = vector.load %arg5[%c0_8, %c0_9] : memref<1x128xf32, #tpu.memory_space<vmem>>, vector<1x128xf32>
    %12 = vector.broadcast %11 : vector<1x128xf32> to vector<256x128xf32>
    %13 = arith.addf %10, %12 : vector<256x128xf32>
    %14 = math.tanh %13 : vector<256x128xf32>
    %15 = arith.truncf %14 : vector<256x128xf32> to vector<256x128xbf16>
    %c0_10 = arith.constant 0 : index
    %c0_11 = arith.constant 0 : index
    %16 = vector.load %arg6[%c0_10, %c0_11] : memref<128x128xbf16, #tpu.memory_space<vmem>>, vector<128x128xbf16>
    %cst_12 = arith.constant dense<0.000000e+00> : vector<256x128xf32>
    %17 = tpu.matmul %15, %16, %cst_12 {dimension_numbers = #tpu.dot_dimension_numbers<[1], [0], [0], [1], [0, 0, 1, 1], [], []>} : vector<256x128xbf16>, vector<128x128xbf16>, vector<256x128xf32> -> vector<256x128xf32>
    %c0_13 = arith.constant 0 : index
    %c0_14 = arith.constant 0 : index
    %18 = vector.load %arg7[%c0_13, %c0_14] : memref<1x128xf32, #tpu.memory_space<vmem>>, vector<1x128xf32>
    %19 = vector.broadcast %18 : vector<1x128xf32> to vector<256x128xf32>
    %20 = arith.addf %17, %19 : vector<256x128xf32>
    %21 = math.tanh %20 : vector<256x128xf32>
    %c0_15 = arith.constant 0 : index
    %c0_16 = arith.constant 0 : index
    %22 = vector.load %arg8[%c0_15, %c0_16] : memref<1x128xf32, #tpu.memory_space<vmem>>, vector<1x128xf32>
    %23 = vector.broadcast %22 : vector<1x128xf32> to vector<256x128xf32>
    %24 = arith.mulf %21, %23 : vector<256x128xf32>
    %cst_17 = arith.constant dense<0.000000e+00> : vector<256xf32>
    %25 = vector.multi_reduction <add>, %24, %cst_17 [1] : vector<256x128xf32> to vector<256xf32>
    %26 = vector.shape_cast %25 : vector<256xf32> to vector<256x1xf32>
    %c0_18 = arith.constant 0 : index
    %c0_19 = arith.constant 0 : index
    %27 = vector.load %arg9[%c0_18, %c0_19] : memref<1x1xf32, #tpu.memory_space<vmem>>, vector<1x1xf32>
    %28 = vector.broadcast %27 : vector<1x1xf32> to vector<256x1xf32>
    %29 = arith.addf %26, %28 : vector<256x1xf32>
    %c0_20 = arith.constant 0 : index
    %c0_21 = arith.constant 0 : index
    %30 = vector.load %arg10[%c0_20, %c0_21] : memref<256x1xf32, #tpu.memory_space<vmem>>, vector<256x1xf32>
    tpu.vector_store %arg10[%c0_20, %c0_21], %29 {strides = array<i32>} : memref<256x1xf32, #tpu.memory_space<vmem>>, vector<256x1xf32>,
    return
  }
  func.func @transform_0(%arg0: i32) -> (i32, i32) {
    %c0_i32 = arith.constant 0 : i32
    %c0_i32_0 = arith.constant 0 : i32
    return %arg0, %c0_i32 : i32, i32
  }
  func.func @transform_1(%arg0: i32) -> (i32, i32) {
    %c0_i32 = arith.constant 0 : i32
    %c0_i32_0 = arith.constant 0 : i32
    %c0_i32_1 = arith.constant 0 : i32
    return %c0_i32, %c0_i32_0 : i32, i32
  }
  func.func @transform_2(%arg0: i32) -> (i32, i32) {
    %c0_i32 = arith.constant 0 : i32
    %c0_i32_0 = arith.constant 0 : i32
    %c0_i32_1 = arith.constant 0 : i32
    return %c0_i32, %c0_i32_0 : i32, i32
  }
  func.func @transform_3(%arg0: i32) -> (i32, i32) {
    %c0_i32 = arith.constant 0 : i32
    %c0_i32_0 = arith.constant 0 : i32
    %c0_i32_1 = arith.constant 0 : i32
    return %c0_i32, %c0_i32_0 : i32, i32
  }
  func.func @transform_4(%arg0: i32) -> (i32, i32) {
    %c0_i32 = arith.constant 0 : i32
    %c0_i32_0 = arith.constant 0 : i32
    %c0_i32_1 = arith.constant 0 : i32
    return %c0_i32, %c0_i32_0 : i32, i32
  }
  func.func @transform_5(%arg0: i32) -> (i32, i32) {
    %c0_i32 = arith.constant 0 : i32
    %c0_i32_0 = arith.constant 0 : i32
    %c0_i32_1 = arith.constant 0 : i32
    return %c0_i32, %c0_i32_0 : i32, i32
  }
  func.func @transform_6(%arg0: i32) -> (i32, i32) {
    %c0_i32 = arith.constant 0 : i32
    %c0_i32_0 = arith.constant 0 : i32
    %c0_i32_1 = arith.constant 0 : i32
    return %c0_i32, %c0_i32_0 : i32, i32
  }
  func.func @transform_7(%arg0: i32) -> (i32, i32) {
    %c0_i32 = arith.constant 0 : i32
    %c0_i32_0 = arith.constant 0 : i32
    %c0_i32_1 = arith.constant 0 : i32
    return %c0_i32, %c0_i32_0 : i32, i32
  }
  func.func @transform_8(%arg0: i32) -> (i32, i32) {
    %c0_i32 = arith.constant 0 : i32
    %c0_i32_0 = arith.constant 0 : i32
    %c0_i32_1 = arith.constant 0 : i32
    return %c0_i32, %c0_i32_0 : i32, i32
  }
  func.func @transform_9(%arg0: i32) -> (i32, i32) {
    %c0_i32 = arith.constant 0 : i32
    %c0_i32_0 = arith.constant 0 : i32
    return %arg0, %c0_i32 : i32, i32
  }
}

</mosaic_0001>

<bundles_post_ra>
// kernel: _critic_forward_impl.1
= control target key start
LH: loop header
LB: loop body
LE: loop exit
PB: predicated region body
PF: predicated region fallthrough
CT: control target
= control target key end

     0   :  { %vm98_vm0 = vcmask 130048   ;;  %vm1042_vm1 = vcmask 7168   ;;  %s2070_s1 = inlined_call_operand.vmem [shape: bf16[16,128], index: 1, kind: input, shape index: {}]   ;;  %s2071_s0 = inlined_call_operand.vmem [shape: f32[256,16], index: 0, kind: input, shape index: {}]   ;;  %s2072_s3 = inlined_call_operand.vmem [shape: bf16[128,128], index: 3, kind: input, shape index: {}]   ;;  %s2073_s5 = inlined_call_operand.vmem [shape: bf16[128,128], index: 5, kind: input, shape index: {}]   ;;  %s2074_s2 = inlined_call_operand.vmem [shape: f32[1,128], index: 2, kind: input, shape index: {}]   ;;  %s2075_s4 = inlined_call_operand.vmem [shape: f32[1,128], index: 4, kind: input, shape index: {}]   ;;  %s2076_s8 = inlined_call_operand.<no memory space> [shape: f32[1,1], index: 8, kind: input, shape index: {}]   ;;  %s2077_s6 = inlined_call_operand.vmem [shape: f32[1,128], index: 6, kind: input, shape index: {}]   ;;  %s2078_s7 = inlined_call_operand.vmem [shape: f32[1,128], index: 7, kind: input, shape index: {}]   ;;  %s2079_s9 = inlined_call_operand.vmem [shape: f32[256,1], index: 9, kind: output, shape index: {}]  }
   0x1   :  { %v1314_v0 = vld [vmem:[%s2070_s1] sm:$0xff]   ;;  %v36_v2 = vld [vmem:[%s2071_s0 + $0x8] sm:$0xff]  ;;  %v37_v3 = vld [vmem:[%s2071_s0 + $0x10] sm:$0xff] }
   0x2   :  { %v35_v1 = vld [vmem:[%s2071_s0] sm:$0xff]  ;;  %1182 = vmatprep.subr.bf16.mxu0 %v1314_v0  ;;  %v38_v5 = vld [vmem:[%s2071_s0 + $0x18] sm:$0xff]  ;;  %v40_v7 = vld [vmem:[%s2071_s0 + $0x28] sm:$0xff]  ;;  %1312 = vmatprep.subr.bf16.mxu1 %v1314_v0 }
   0x3   :  { %v67_v4 = vpack.c.bf16 %v36_v2, %v35_v1  ;;  %v39_v6 = vld [vmem:[%s2071_s0 + $0x20] sm:$0xff]  ;;  %1183 = vmatpush3.bf16.msra.mxu0 %v1314_v0  ;;  %v68_v8 = vpack.c.bf16 %v38_v5, %v37_v3  ;;  %1313 = vmatpush3.bf16.msra.mxu1 %v1314_v0  ;;  %v41_v10 = vld [vmem:[%s2071_s0 + $0x30] sm:$0xff]  ;;  %v42_v11 = vld [vmem:[%s2071_s0 + $0x38] sm:$0xff] }
   0x4   :  { %v69_v9 = vpack.c.bf16 %v40_v7, %v39_v6  ;;  %v51_v12 = vld [vmem:[%s2071_s0 + $0x80] sm:$0xff]  ;;  %v52_v13 = vld [vmem:[%s2071_s0 + $0x88] sm:$0xff]  ;;  %v53_v15 = vld [vmem:[%s2071_s0 + $0x90] sm:$0xff]  ;;  %v70_v23 = vpack.c.bf16 %v42_v11, %v41_v10 }
   0x5   :  { %1184 = vmatprep.mubr.msk.bf16.mxu0 %vm98_vm0, %v67_v4  ;;  %v75_v14 = vpack.c.bf16 %v52_v13, %v51_v12  ;;  %v54_v16 = vld [vmem:[%s2071_s0 + $0x98] sm:$0xff]  ;;  %v55_v17 = vld [vmem:[%s2071_s0 + $0xa0] sm:$0xff]  ;;  %v44_v19 = vld [vmem:[%s2071_s0 + $0x48] sm:$0xff] }
   0x6   :  { %1185 = vmatmul.mubr.msk.bf16.vlgmr.msra.gmra.mrb[0].mxu0 %vm98_vm0, %v68_v8  ;;  %v43_v18 = vld [vmem:[%s2071_s0 + $0x40] sm:$0xff]  ;;  %v76_v20 = vpack.c.bf16 %v54_v16, %v53_v15  ;;  %v56_v21 = vld [vmem:[%s2071_s0 + $0xa8] sm:$0xff]  ;;  %v57_v24 = vld [vmem:[%s2071_s0 + $0xb0] sm:$0xff] }
   0x7   :  { %1188 = vmatprep.mubr.msk.bf16.mxu0 %vm98_vm0, %v69_v9  ;;  %1200 = vmatprep.mubr.msk.bf16.mxu1 %vm98_vm0, %v75_v14  ;;  %v77_v22 = vpack.c.bf16 %v56_v21, %v55_v17  ;;  %v58_v25 = vld [vmem:[%s2071_s0 + $0xb8] sm:$0xff]  ;;  %v71_v26 = vpack.c.bf16 %v44_v19, %v43_v18  ;;  %v59_v27 = vld [vmem:[%s2071_s0 + $0xc0] sm:$0xff]  ;;  %v60_v28 = vld [vmem:[%s2071_s0 + $0xc8] sm:$0xff] }
   0x8   :  { %1201 = vmatmul.mubr.msk.bf16.vlgmr.msra.gmra.mrb[0].mxu1 %vm98_vm0, %v76_v20  ;;  %v1315_v29 = vld [vmem:[%s2072_s3] sm:$0xff]   ;;  %v45_v30 = vld [vmem:[%s2071_s0 + $0x50] sm:$0xff]  ;;  %v46_v31 = vld [vmem:[%s2071_s0 + $0x58] sm:$0xff]  ;;  %v78_v35 = vpack.c.bf16 %v58_v25, %v57_v24  ;;  %v79_v36 = vpack.c.bf16 %v60_v28, %v59_v27 }
   0x9   :  { %1204 = vmatprep.mubr.msk.bf16.mxu1 %vm98_vm0, %v77_v22  ;;  %v1316_v32 = vld [vmem:[%s2072_s3 + $0x8] sm:$0xff]   ;;  %v47_v33 = vld [vmem:[%s2071_s0 + $0x60] sm:$0xff]  ;;  %1216 = vmatprep.subr.bf16.mxu1 %v1315_v29  ;;  %v1317_v37 = vld [vmem:[%s2072_s3 + $0x10] sm:$0xff]   ;;  %v72_v38 = vpack.c.bf16 %v46_v31, %v45_v30 }
   0xa   :  { %v48_v34 = vld [vmem:[%s2071_s0 + $0x68] sm:$0xff]  ;;  %1217 = vmatpush3.bf16.msra.mxu1 %v1315_v29  ;;  %v61_v40 = vld [vmem:[%s2071_s0 + $0xd0] sm:$0xff]  ;;  %v62_v41 = vld [vmem:[%s2071_s0 + $0xd8] sm:$0xff] }
   0xb   :  { %1218 = vmatprep.subr.bf16.mxu1 %v1316_v32  ;;  %v73_v39 = vpack.c.bf16 %v48_v34, %v47_v33  ;;  %v63_v42 = vld [vmem:[%s2071_s0 + $0xe0] sm:$0xff]  ;;  %v64_v43 = vld [vmem:[%s2071_s0 + $0xe8] sm:$0xff]  ;;  %v1318_v44 = vld [vmem:[%s2072_s3 + $0x18] sm:$0xff]   ;;  %v80_v45 = vpack.c.bf16 %v62_v41, %v61_v40 }
   0xc   :  { %v49_v46 = vld [vmem:[%s2071_s0 + $0x70] sm:$0xff]  ;;  %v50_v47 = vld [vmem:[%s2071_s0 + $0x78] sm:$0xff]  ;;  %v81_v48 = vpack.c.bf16 %v64_v43, %v63_v42  ;;  %v1319_v53 = vld [vmem:[%s2072_s3 + $0x20] sm:$0xff]  }
   0xd   :  { %v74_v49 = vpack.c.bf16 %v50_v47, %v49_v46  ;;  %v65_v50 = vld [vmem:[%s2071_s0 + $0xf0] sm:$0xff]  ;;  %v66_v51 = vld [vmem:[%s2071_s0 + $0xf8] sm:$0xff]  ;;  %v1320_v54 = vld [vmem:[%s2072_s3 + $0x28] sm:$0xff]  }
   0xe   :  { %1189 = vmatmul.mubr.msk.bf16.gmra.mrb[4].mxu0 %vm98_vm0, %v70_v23  ;;  %1219 = vmatpush3.bf16.msra.mxu1 %v1316_v32  ;;  %v82_v52 = vpack.c.bf16 %v66_v51, %v65_v50  ;;  %v1321_v55 = vld [vmem:[%s2072_s3 + $0x30] sm:$0xff]   ;;  %v1322_v56 = vld [vmem:[%s2072_s3 + $0x38] sm:$0xff]   ;;  %v1323_v57 = vld [vmem:[%s2073_s5] sm:$0xff]  }
   0xf   :  { %1192 = vmatprep.mubr.msk.bf16.mxu0 %vm98_vm0, %v71_v26  ;;  %1220 = vmatprep.subr.bf16.mxu1 %v1317_v37  ;;  %v1324_v58 = vld [vmem:[%s2073_s5 + $0x8] sm:$0xff]   ;;  %v1325_v59 = vld [vmem:[%s2073_s5 + $0x10] sm:$0xff]   ;;  %v1326_v60 = vld [vmem:[%s2073_s5 + $0x18] sm:$0xff]  }
  0x10   :  { %1205 = vmatmul.mubr.msk.bf16.gmra.mrb[4].mxu1 %vm98_vm0, %v78_v35  ;;  %1264 = vmatprep.subr.bf16.mxu0 %v1323_v57  ;;  %v1727_v61 = vld [vmem:[%s2074_s2] ss:$0 sm:$0xff] }
  0x11   :  { %1208 = vmatprep.mubr.msk.bf16.mxu1 %vm98_vm0, %v79_v36  ;;  %1265 = vmatpush3.bf16.msra.mxu0 %v1323_v57 }
  0x12   :  { %1221 = vmatpush3.bf16.msra.mxu1 %v1317_v37  ;;  %1266 = vmatprep.subr.bf16.mxu0 %v1324_v58 }
  0x13   :  { %1222 = vmatprep.subr.bf16.mxu1 %v1318_v44 }
  0x15   :  { %1267 = vmatpush3.bf16.msra.mxu0 %v1324_v58 }
  0x16   :  { %1193 = vmatmul.mubr.msk.bf16.gmra.mrb[8].mxu0 %vm98_vm0, %v72_v38  ;;  %1223 = vmatpush3.bf16.msra.mxu1 %v1318_v44 }
  0x17   :  { %1196 = vmatprep.mubr.msk.bf16.mxu0 %vm98_vm0, %v73_v39  ;;  %1224 = vmatprep.subr.bf16.mxu1 %v1319_v53 }
  0x18   :  { %1209 = vmatmul.mubr.msk.bf16.gmra.mrb[8].mxu1 %vm98_vm0, %v80_v45  ;;  %1268 = vmatprep.subr.bf16.mxu0 %v1325_v59 }
  0x19   :  { %1212 = vmatprep.mubr.msk.bf16.mxu1 %vm98_vm0, %v81_v48  ;;  %1269 = vmatpush3.bf16.msra.mxu0 %v1325_v59 }
  0x1a   :  { %1225 = vmatpush3.bf16.msra.mxu1 %v1319_v53  ;;  %1270 = vmatprep.subr.bf16.mxu0 %v1326_v60 }
  0x1b   :  { %1226 = vmatprep.subr.bf16.mxu1 %v1320_v54 }
  0x1d   :  { %1271 = vmatpush3.bf16.msra.mxu0 %v1326_v60 }
  0x1e   :  { %1197 = vmatmul.mubr.msk.bf16.gmra.mrb[12].mxu0 %vm98_vm0, %v74_v49  ;;  %1227 = vmatpush3.bf16.msra.mxu1 %v1320_v54 }
  0x1f   :  { %1228 = vmatprep.subr.bf16.mxu1 %v1321_v55 }
  0x20   :  { %1213 = vmatmul.mubr.msk.bf16.gmra.mrb[12].mxu1 %vm98_vm0, %v82_v52 }
  0x22   :  { %1229 = vmatpush3.bf16.msra.mxu1 %v1321_v55 }
  0x23   :  { %1230 = vmatprep.subr.bf16.mxu1 %v1322_v56 }
  0x26   :  { %1231 = vmatpush3.bf16.msra.mxu1 %v1322_v56 }
  0xd9   :  { %v1186_v62 = vpop.f32.mrb[0].mxu0 }
  0xda   :  { %v190_v63 = vadd.f32 %v1186_v62, %v1727_v61  ;;  %v181_v0 = vpop.f32.mrb[1].mxu0 }
  0xdb   :  { %v182_v1 = vadd.f32 %v1727_v61, %v181_v0  ;;  %v1187_v2 = vpop.f32.mrb[2].mxu0  ;;  %v1202_v6 = vpop.f32.mrb[0].mxu1 }
  0xdc   :  { %1331 = vtanh.f32 %v190_v63  ;;  %v193_v3 = vadd.f32 %v1187_v2, %v1727_v61  ;;  %v184_v4 = vpop.f32.mrb[3].mxu0  ;;  %v254_v7 = vadd.f32 %v1202_v6, %v1727_v61  ;;  %v245_v8 = vpop.f32.mrb[1].mxu1 }
  0xdd   :  { %1333 = vtanh.f32 %v182_v1  ;;  %v185_v5 = vadd.f32 %v1727_v61, %v184_v4  ;;  %v246_v9 = vadd.f32 %v1727_v61, %v245_v8  ;;  %v1203_v10 = vpop.f32.mrb[2].mxu1 }
  0xde   :  { %1335 = vtanh.f32 %v193_v3  ;;  %v257_v11 = vadd.f32 %v1203_v10, %v1727_v61  ;;  %v248_v12 = vpop.f32.mrb[3].mxu1 }
  0xdf   :  { %1337 = vtanh.f32 %v185_v5  ;;  %v249_v14 = vadd.f32 %v1727_v61, %v248_v12 }
  0xe0   :  { %1339 = vtanh.f32 %v254_v7 }
  0xe1   :  { %v1190_v13 = vpop.f32.mrb[4].mxu0  ;;  %1341 = vtanh.f32 %v246_v9 }
  0xe2   :  { %v206_v15 = vadd.f32 %v1190_v13, %v1727_v61  ;;  %v197_v16 = vpop.f32.mrb[5].mxu0  ;;  %1343 = vtanh.f32 %v257_v11 }
  0xe3   :  { %v198_v17 = vadd.f32 %v1727_v61, %v197_v16  ;;  %v1191_v18 = vpop.f32.mrb[6].mxu0  ;;  %1345 = vtanh.f32 %v249_v14  ;;  %v1206_v22 = vpop.f32.mrb[4].mxu1 }
  0xe4   :  { %1347 = vtanh.f32 %v206_v15  ;;  %v209_v19 = vadd.f32 %v1191_v18, %v1727_v61  ;;  %v200_v20 = vpop.f32.mrb[7].mxu0  ;;  %v270_v24 = vadd.f32 %v1206_v22, %v1727_v61  ;;  %v261_v25 = vpop.f32.mrb[5].mxu1 }
  0xe5   :  { %1349 = vtanh.f32 %v198_v17  ;;  %v201_v21 = vadd.f32 %v1727_v61, %v200_v20  ;;  %v262_v27 = vadd.f32 %v1727_v61, %v261_v25  ;;  %v1207_v28 = vpop.f32.mrb[6].mxu1 }
  0xe6   :  { %v1332_v23 = vpop.eup %1331  ;;  %1351 = vtanh.f32 %v209_v19  ;;  %v273_v30 = vadd.f32 %v1207_v28, %v1727_v61  ;;  %v264_v31 = vpop.f32.mrb[7].mxu1 }
  0xe7   :  { %v1334_v26 = vpop.eup %1333  ;;  %1353 = vtanh.f32 %v201_v21  ;;  %v265_v35 = vadd.f32 %v1727_v61, %v264_v31 }
  0xe8   :  { %v1336_v29 = vpop.eup %1335  ;;  %1355 = vtanh.f32 %v270_v24 }
  0xe9   :  { %v1338_v32 = vpop.eup %1337  ;;  %v1194_v33 = vpop.f32.mrb[8].mxu0  ;;  %v341_v34 = vpack.c.bf16 %v1336_v29, %v1332_v23  ;;  %1357 = vtanh.f32 %v262_v27 }
  0xea   :  { %v1745_v36 = vpop.eup %1339  ;;  %v222_v37 = vadd.f32 %v1194_v33, %v1727_v61  ;;  %v213_v38 = vpop.f32.mrb[9].mxu0  ;;  %v340_v39 = vpack.c.bf16 %v1338_v32, %v1334_v26  ;;  %1359 = vtanh.f32 %v273_v30 }
  0xeb   :  { %v1748_v40 = vpop.eup %1341  ;;  %v214_v41 = vadd.f32 %v1727_v61, %v213_v38  ;;  %v1195_v42 = vpop.f32.mrb[10].mxu0  ;;  %1361 = vtanh.f32 %v265_v35 }
  0xec   :  { %v1751_v43 = vpop.eup %1343  ;;  %1363 = vtanh.f32 %v222_v37  ;;  %v225_v44 = vadd.f32 %v1195_v42, %v1727_v61  ;;  %v216_v45 = vpop.f32.mrb[11].mxu0  ;;  %1232 = vmatprep.mubr.bf16.mxu1 %v340_v39 }
  0xed   :  { %v1754_v46 = vpop.eup %1345  ;;  %1365 = vtanh.f32 %v214_v41  ;;  %v217_v47 = vadd.f32 %v1727_v61, %v216_v45  ;;  %1233 = vmatmul.mubr.bf16.vlgmr.msra.gmra.mrb[16].mxu1 %v341_v34  ;;  %v1210_v48 = vpop.f32.mrb[8].mxu1  ;;  %v349_v49 = vpack.c.bf16 %v1751_v43, %v1745_v36  ;;  %v1329_v36 = vld [vmem:[%s2073_s5 + $0x30] sm:$0xff]   ;;  %v1330_v43 = vld [vmem:[%s2073_s5 + $0x38] sm:$0xff]  }
  0xee   :  { %v1348_v50 = vpop.eup %1347  ;;  %1367 = vtanh.f32 %v225_v44  ;;  %v286_v51 = vadd.f32 %v1210_v48, %v1727_v61  ;;  %v277_v52 = vpop.f32.mrb[9].mxu1  ;;  %v348_v53 = vpack.c.bf16 %v1754_v46, %v1748_v40  ;;  %v1328_v40 = vld [vmem:[%s2073_s5 + $0x28] sm:$0xff]   ;;  %v1797_v46 = vld [vmem:[%s2075_s4] ss:$0 sm:$0xff] }
  0xef   :  { %v1350_v54 = vpop.eup %1349  ;;  %1369 = vtanh.f32 %v217_v47  ;;  %v278_v55 = vadd.f32 %v1727_v61, %v277_v52  ;;  %v1211_v56 = vpop.f32.mrb[10].mxu1 }
  0xf0   :  { %v1352_v57 = vpop.eup %1351  ;;  %1371 = vtanh.f32 %v286_v51  ;;  %v289_v58 = vadd.f32 %v1211_v56, %v1727_v61  ;;  %v280_v59 = vpop.f32.mrb[11].mxu1  ;;  %v1327_v51 = vld [vmem:[%s2073_s5 + $0x20] sm:$0xff]  }
  0xf1   :  { %v1354_v60 = vpop.eup %1353  ;;  %v1198_v62 = vpop.f32.mrb[12].mxu0  ;;  %v343_v63 = vpack.c.bf16 %v1352_v57, %v1348_v50  ;;  %1373 = vtanh.f32 %v278_v55  ;;  %v281_v0 = vadd.f32 %v1727_v61, %v280_v59  ;;  %1272 = vmatprep.subr.bf16.mxu0 %v1327_v51 }
  0xf2   :  { %v1765_v1 = vpop.eup %1355  ;;  %v238_v2 = vadd.f32 %v1198_v62, %v1727_v61  ;;  %v229_v3 = vpop.f32.mrb[13].mxu0  ;;  %v342_v4 = vpack.c.bf16 %v1354_v60, %v1350_v54  ;;  %1375 = vtanh.f32 %v289_v58  ;;  %1273 = vmatpush3.bf16.msra.mxu0 %v1327_v51 }
  0xf3   :  { %v1358_v5 = vpop.eup %1357  ;;  %v230_v6 = vadd.f32 %v1727_v61, %v229_v3  ;;  %v1199_v7 = vpop.f32.mrb[14].mxu0  ;;  %1377 = vtanh.f32 %v281_v0  ;;  %1274 = vmatprep.subr.bf16.mxu0 %v1328_v40 }
  0xf4   :  { %v1360_v8 = vpop.eup %1359  ;;  %1379 = vtanh.f32 %v238_v2  ;;  %v241_v9 = vadd.f32 %v1199_v7, %v1727_v61  ;;  %v232_v10 = vpop.f32.mrb[15].mxu0  ;;  %1236 = vmatprep.mubr.bf16.mxu1 %v342_v4 }
  0xf5   :  { %v1362_v11 = vpop.eup %1361  ;;  %1381 = vtanh.f32 %v230_v6  ;;  %v233_v12 = vadd.f32 %v1727_v61, %v232_v10  ;;  %1237 = vmatmul.mubr.bf16.gmra.mrb[20].mxu1 %v343_v63  ;;  %v1214_v13 = vpop.f32.mrb[12].mxu1  ;;  %v351_v14 = vpack.c.bf16 %v1360_v8, %v1765_v1 }
  0xf6   :  { %v1364_v15 = vpop.eup %1363  ;;  %1383 = vtanh.f32 %v241_v9  ;;  %v302_v16 = vadd.f32 %v1214_v13, %v1727_v61  ;;  %v293_v17 = vpop.f32.mrb[13].mxu1  ;;  %v350_v18 = vpack.c.bf16 %v1362_v11, %v1358_v5  ;;  %1275 = vmatpush3.bf16.msra.mxu0 %v1328_v40 }
  0xf7   :  { %v1366_v19 = vpop.eup %1365  ;;  %1385 = vtanh.f32 %v233_v12  ;;  %v294_v20 = vadd.f32 %v1727_v61, %v293_v17  ;;  %v1215_v21 = vpop.f32.mrb[14].mxu1  ;;  %1276 = vmatprep.subr.bf16.mxu0 %v1329_v36 }
  0xf8   :  { %v1368_v22 = vpop.eup %1367  ;;  %1387 = vtanh.f32 %v302_v16  ;;  %v305_v23 = vadd.f32 %v1215_v21, %v1727_v61  ;;  %v296_v24 = vpop.f32.mrb[15].mxu1 }
  0xf9   :  { %v1370_v25 = vpop.eup %1369  ;;  %v345_v26 = vpack.c.bf16 %v1368_v22, %v1364_v15  ;;  %1389 = vtanh.f32 %v294_v20  ;;  %v297_v27 = vadd.f32 %v1727_v61, %v296_v24 }
  0xfa   :  { %v1372_v28 = vpop.eup %1371  ;;  %v344_v29 = vpack.c.bf16 %v1370_v25, %v1366_v19  ;;  %1391 = vtanh.f32 %v305_v23  ;;  %1277 = vmatpush3.bf16.msra.mxu0 %v1329_v36 }
  0xfb   :  { %v1374_v30 = vpop.eup %1373  ;;  %1393 = vtanh.f32 %v297_v27  ;;  %1278 = vmatprep.subr.bf16.mxu0 %v1330_v43 }
  0xfc   :  { %v1376_v31 = vpop.eup %1375  ;;  %1240 = vmatprep.mubr.bf16.mxu1 %v344_v29 }
  0xfd   :  { %v1378_v32 = vpop.eup %1377  ;;  %1241 = vmatmul.mubr.bf16.gmra.mrb[24].mxu1 %v345_v26  ;;  %v353_v33 = vpack.c.bf16 %v1376_v31, %v1372_v28 }
  0xfe   :  { %v1380_v34 = vpop.eup %1379  ;;  %v352_v35 = vpack.c.bf16 %v1378_v32, %v1374_v30  ;;  %1279 = vmatpush3.bf16.msra.mxu0 %v1330_v43 }
  0xff   :  { %v1382_v37 = vpop.eup %1381 }
 0x100   :  { %v1384_v38 = vpop.eup %1383 }
 0x101   :  { %v1386_v39 = vpop.eup %1385  ;;  %v347_v41 = vpack.c.bf16 %v1384_v38, %v1380_v34 }
 0x102   :  { %v1388_v42 = vpop.eup %1387  ;;  %v346_v44 = vpack.c.bf16 %v1386_v39, %v1382_v37 }
 0x103   :  { %v1390_v45 = vpop.eup %1389 }
 0x104   :  { %v1392_v61 = vpop.eup %1391  ;;  %1244 = vmatprep.mubr.bf16.mxu1 %v346_v44 }
 0x105   :  { %v1394_v47 = vpop.eup %1393  ;;  %1245 = vmatmul.mubr.bf16.gmra.mrb[28].mxu1 %v347_v41  ;;  %v355_v48 = vpack.c.bf16 %v1392_v61, %v1388_v42 }
 0x106   :  { %1248 = vmatprep.mubr.bf16.mxu1 %v348_v53  ;;  %v354_v50 = vpack.c.bf16 %v1394_v47, %v1390_v45 }
 0x10d   :  { %1249 = vmatmul.mubr.bf16.gmra.mrb[32].mxu1 %v349_v49 }
 0x10e   :  { %1252 = vmatprep.mubr.bf16.mxu1 %v350_v18 }
 0x115   :  { %1253 = vmatmul.mubr.bf16.gmra.mrb[36].mxu1 %v351_v14 }
 0x116   :  { %1256 = vmatprep.mubr.bf16.mxu1 %v352_v35 }
 0x11d   :  { %1257 = vmatmul.mubr.bf16.gmra.mrb[40].mxu1 %v353_v33 }
 0x11e   :  { %1260 = vmatprep.mubr.bf16.mxu1 %v354_v50 }
 0x125   :  { %1261 = vmatmul.mubr.bf16.gmra.mrb[44].mxu1 %v355_v48 }
 0x1c0   :  { %v1234_v49 = vpop.f32.mrb[16].mxu1 }
 0x1c1   :  { %v470_v52 = vadd.f32 %v1234_v49, %v1797_v46  ;;  %v461_v53 = vpop.f32.mrb[17].mxu1 }
 0x1c2   :  { %v462_v54 = vadd.f32 %v1797_v46, %v461_v53  ;;  %v1235_v55 = vpop.f32.mrb[18].mxu1 }
 0x1c3   :  { %1395 = vtanh.f32 %v470_v52  ;;  %v473_v56 = vadd.f32 %v1235_v55, %v1797_v46  ;;  %v464_v57 = vpop.f32.mrb[19].mxu1 }
 0x1c4   :  { %1397 = vtanh.f32 %v462_v54  ;;  %v465_v58 = vadd.f32 %v1797_v46, %v464_v57 }
 0x1c5   :  { %1399 = vtanh.f32 %v473_v56 }
 0x1c6   :  { %1401 = vtanh.f32 %v465_v58 }
 0x1c8   :  { %v1238_v59 = vpop.f32.mrb[20].mxu1 }
 0x1c9   :  { %v486_v60 = vadd.f32 %v1238_v59, %v1797_v46  ;;  %v477_v62 = vpop.f32.mrb[21].mxu1 }
 0x1ca   :  { %v478_v63 = vadd.f32 %v1797_v46, %v477_v62  ;;  %v1239_v0 = vpop.f32.mrb[22].mxu1 }
 0x1cb   :  { %1403 = vtanh.f32 %v486_v60  ;;  %v489_v1 = vadd.f32 %v1239_v0, %v1797_v46  ;;  %v480_v2 = vpop.f32.mrb[23].mxu1 }
 0x1cc   :  { %1405 = vtanh.f32 %v478_v63  ;;  %v481_v3 = vadd.f32 %v1797_v46, %v480_v2 }
 0x1cd   :  { %v1396_v4 = vpop.eup %1395  ;;  %1407 = vtanh.f32 %v489_v1 }
 0x1ce   :  { %v1398_v5 = vpop.eup %1397  ;;  %1409 = vtanh.f32 %v481_v3 }
 0x1cf   :  { %v1400_v6 = vpop.eup %1399 }
 0x1d0   :  { %v1402_v7 = vpop.eup %1401  ;;  %v1242_v8 = vpop.f32.mrb[24].mxu1  ;;  %v621_v9 = vpack.c.bf16 %v1400_v6, %v1396_v4 }
 0x1d1   :  { %v502_v10 = vadd.f32 %v1242_v8, %v1797_v46  ;;  %v493_v11 = vpop.f32.mrb[25].mxu1  ;;  %v620_v12 = vpack.c.bf16 %v1402_v7, %v1398_v5 }
 0x1d2   :  { %v494_v13 = vadd.f32 %v1797_v46, %v493_v11  ;;  %v1243_v14 = vpop.f32.mrb[26].mxu1 }
 0x1d3   :  { %1411 = vtanh.f32 %v502_v10  ;;  %v505_v15 = vadd.f32 %v1243_v14, %v1797_v46  ;;  %v496_v16 = vpop.f32.mrb[27].mxu1  ;;  %1280 = vmatprep.mubr.bf16.mxu0 %v620_v12 }
 0x1d4   :  { %1413 = vtanh.f32 %v494_v13  ;;  %v497_v17 = vadd.f32 %v1797_v46, %v496_v16  ;;  %1281 = vmatmul.mubr.bf16.vlgmr.msra.gmra.mrb[16].mxu0 %v621_v9 }
 0x1d5   :  { %v1404_v18 = vpop.eup %1403  ;;  %1415 = vtanh.f32 %v505_v15 }
 0x1d6   :  { %v1406_v19 = vpop.eup %1405  ;;  %1417 = vtanh.f32 %v497_v17 }
 0x1d7   :  { %v1408_v20 = vpop.eup %1407 }
 0x1d8   :  { %v1410_v21 = vpop.eup %1409  ;;  %v1246_v22 = vpop.f32.mrb[28].mxu1  ;;  %v623_v23 = vpack.c.bf16 %v1408_v20, %v1404_v18 }
 0x1d9   :  { %v518_v24 = vadd.f32 %v1246_v22, %v1797_v46  ;;  %v509_v25 = vpop.f32.mrb[29].mxu1  ;;  %v622_v26 = vpack.c.bf16 %v1410_v21, %v1406_v19 }
 0x1da   :  { %v510_v27 = vadd.f32 %v1797_v46, %v509_v25  ;;  %v1247_v28 = vpop.f32.mrb[30].mxu1 }
 0x1db   :  { %1419 = vtanh.f32 %v518_v24  ;;  %v521_v29 = vadd.f32 %v1247_v28, %v1797_v46  ;;  %v512_v30 = vpop.f32.mrb[31].mxu1  ;;  %1284 = vmatprep.mubr.bf16.mxu0 %v622_v26 }
 0x1dc   :  { %1421 = vtanh.f32 %v510_v27  ;;  %v513_v31 = vadd.f32 %v1797_v46, %v512_v30  ;;  %1285 = vmatmul.mubr.bf16.gmra.mrb[20].mxu0 %v623_v23 }
 0x1dd   :  { %v1412_v32 = vpop.eup %1411  ;;  %1423 = vtanh.f32 %v521_v29 }
 0x1de   :  { %v1414_v33 = vpop.eup %1413  ;;  %1425 = vtanh.f32 %v513_v31 }
 0x1df   :  { %v1416_v34 = vpop.eup %1415 }
 0x1e0   :  { %v1418_v35 = vpop.eup %1417  ;;  %v1250_v37 = vpop.f32.mrb[32].mxu1  ;;  %v625_v38 = vpack.c.bf16 %v1416_v34, %v1412_v32 }
 0x1e1   :  { %v534_v39 = vadd.f32 %v1250_v37, %v1797_v46  ;;  %v525_v41 = vpop.f32.mrb[33].mxu1  ;;  %v624_v42 = vpack.c.bf16 %v1418_v35, %v1414_v33 }
 0x1e2   :  { %v526_v44 = vadd.f32 %v1797_v46, %v525_v41  ;;  %v1251_v45 = vpop.f32.mrb[34].mxu1 }
 0x1e3   :  { %1427 = vtanh.f32 %v534_v39  ;;  %v537_v61 = vadd.f32 %v1251_v45, %v1797_v46  ;;  %v528_v47 = vpop.f32.mrb[35].mxu1  ;;  %1288 = vmatprep.mubr.bf16.mxu0 %v624_v42 }
 0x1e4   :  { %1429 = vtanh.f32 %v526_v44  ;;  %v529_v48 = vadd.f32 %v1797_v46, %v528_v47  ;;  %1289 = vmatmul.mubr.bf16.gmra.mrb[24].mxu0 %v625_v38  ;;  %v1837_v38 = vld [vmem:[%s2077_s6] ss:$0 sm:$0xff] }
 0x1e5   :  { %v1420_v50 = vpop.eup %1419  ;;  %1431 = vtanh.f32 %v537_v61 }
 0x1e6   :  { %v1422_v51 = vpop.eup %1421  ;;  %1433 = vtanh.f32 %v529_v48 }
 0x1e7   :  { %v1424_v40 = vpop.eup %1423 }
 0x1e8   :  { %v1426_v36 = vpop.eup %1425  ;;  %v1254_v43 = vpop.f32.mrb[36].mxu1  ;;  %v627_v49 = vpack.c.bf16 %v1424_v40, %v1420_v50 }
 0x1e9   :  { %v550_v52 = vadd.f32 %v1254_v43, %v1797_v46  ;;  %v541_v53 = vpop.f32.mrb[37].mxu1  ;;  %v626_v54 = vpack.c.bf16 %v1426_v36, %v1422_v51 }
 0x1ea   :  { %v542_v55 = vadd.f32 %v1797_v46, %v541_v53  ;;  %v1255_v56 = vpop.f32.mrb[38].mxu1  ;;  %v1849_v53 = vld [vmem:[%s2078_s7] ss:$0 sm:$0xff] }
 0x1eb   :  { %1435 = vtanh.f32 %v550_v52  ;;  %v553_v57 = vadd.f32 %v1255_v56, %v1797_v46  ;;  %v544_v58 = vpop.f32.mrb[39].mxu1  ;;  %1292 = vmatprep.mubr.bf16.mxu0 %v626_v54 }
 0x1ec   :  { %1437 = vtanh.f32 %v542_v55  ;;  %v545_v59 = vadd.f32 %v1797_v46, %v544_v58  ;;  %1293 = vmatmul.mubr.bf16.gmra.mrb[28].mxu0 %v627_v49 }
 0x1ed   :  { %v1428_v60 = vpop.eup %1427  ;;  %1439 = vtanh.f32 %v553_v57 }
 0x1ee   :  { %v1430_v62 = vpop.eup %1429  ;;  %1441 = vtanh.f32 %v545_v59 }
 0x1ef   :  { %v1432_v63 = vpop.eup %1431 }
 0x1f0   :  { %v1434_v0 = vpop.eup %1433  ;;  %v1258_v1 = vpop.f32.mrb[40].mxu1  ;;  %v629_v2 = vpack.c.bf16 %v1432_v63, %v1428_v60 }
 0x1f1   :  { %v566_v3 = vadd.f32 %v1258_v1, %v1797_v46  ;;  %v557_v4 = vpop.f32.mrb[41].mxu1  ;;  %v628_v5 = vpack.c.bf16 %v1434_v0, %v1430_v62 }
 0x1f2   :  { %v558_v6 = vadd.f32 %v1797_v46, %v557_v4  ;;  %v1259_v7 = vpop.f32.mrb[42].mxu1 }
 0x1f3   :  { %1443 = vtanh.f32 %v566_v3  ;;  %v569_v8 = vadd.f32 %v1259_v7, %v1797_v46  ;;  %v560_v9 = vpop.f32.mrb[43].mxu1  ;;  %1296 = vmatprep.mubr.bf16.mxu0 %v628_v5 }
 0x1f4   :  { %1445 = vtanh.f32 %v558_v6  ;;  %v561_v10 = vadd.f32 %v1797_v46, %v560_v9  ;;  %1297 = vmatmul.mubr.bf16.gmra.mrb[32].mxu0 %v629_v2 }
 0x1f5   :  { %v1436_v11 = vpop.eup %1435  ;;  %1447 = vtanh.f32 %v569_v8 }
 0x1f6   :  { %v1438_v12 = vpop.eup %1437  ;;  %1449 = vtanh.f32 %v561_v10 }
 0x1f7   :  { %v1440_v13 = vpop.eup %1439 }
 0x1f8   :  { %v1442_v14 = vpop.eup %1441  ;;  %v1262_v15 = vpop.f32.mrb[44].mxu1  ;;  %v631_v16 = vpack.c.bf16 %v1440_v13, %v1436_v11 }
 0x1f9   :  { %v582_v17 = vadd.f32 %v1262_v15, %v1797_v46  ;;  %v573_v18 = vpop.f32.mrb[45].mxu1  ;;  %v630_v19 = vpack.c.bf16 %v1442_v14, %v1438_v12 }
 0x1fa   :  { %v574_v20 = vadd.f32 %v1797_v46, %v573_v18  ;;  %v1263_v21 = vpop.f32.mrb[46].mxu1 }
 0x1fb   :  { %1451 = vtanh.f32 %v582_v17  ;;  %v585_v22 = vadd.f32 %v1263_v21, %v1797_v46  ;;  %v576_v23 = vpop.f32.mrb[47].mxu1  ;;  %1300 = vmatprep.mubr.bf16.mxu0 %v630_v19 }
 0x1fc   :  { %1453 = vtanh.f32 %v574_v20  ;;  %v577_v24 = vadd.f32 %v1797_v46, %v576_v23  ;;  %1301 = vmatmul.mubr.bf16.gmra.mrb[36].mxu0 %v631_v16  ;;  %v14_v46 = vstv %s2076_s8 }
 0x1fd   :  { %v1444_v25 = vpop.eup %1443  ;;  %1455 = vtanh.f32 %v585_v22  ;;  %15 = vst [vmem:[#allocation2] sm:$0x1] %v14_v46 }
 0x1fe   :  { %v1446_v26 = vpop.eup %1445  ;;  %1457 = vtanh.f32 %v577_v24 }
 0x1ff   :  { %v1448_v27 = vpop.eup %1447 }
 0x200   :  { %v1450_v28 = vpop.eup %1449  ;;  %v633_v29 = vpack.c.bf16 %v1448_v27, %v1444_v25 }
 0x201   :  { %v632_v30 = vpack.c.bf16 %v1450_v28, %v1446_v26 }
 0x203   :  { %1304 = vmatprep.mubr.bf16.mxu0 %v632_v30 }
 0x204   :  { %1305 = vmatmul.mubr.bf16.gmra.mrb[40].mxu0 %v633_v29 }
 0x205   :  { %v1452_v31 = vpop.eup %1451 }
 0x206   :  { %v1454_v32 = vpop.eup %1453 }
 0x207   :  { %v1456_v33 = vpop.eup %1455 }
 0x208   :  { %v1458_v34 = vpop.eup %1457  ;;  %v635_v35 = vpack.c.bf16 %v1456_v33, %v1452_v31 }
 0x209   :  { %v634_v37 = vpack.c.bf16 %v1458_v34, %v1454_v32 }
 0x20b   :  { %1308 = vmatprep.mubr.bf16.mxu0 %v634_v37 }
 0x20c   :  { %1309 = vmatmul.mubr.bf16.gmra.mrb[44].mxu0 %v635_v35 }
 0x2a7   :  { %v1282_v39 = vpop.f32.mrb[16].mxu0 }
 0x2a8   :  { %v750_v41 = vadd.f32 %v1282_v39, %v1837_v38  ;;  %v741_v42 = vpop.f32.mrb[17].mxu0 }
 0x2a9   :  { %v742_v44 = vadd.f32 %v1837_v38, %v741_v42  ;;  %v1283_v45 = vpop.f32.mrb[18].mxu0 }
 0x2aa   :  { %1459 = vtanh.f32 %v750_v41  ;;  %v753_v61 = vadd.f32 %v1283_v45, %v1837_v38  ;;  %v744_v47 = vpop.f32.mrb[19].mxu0 }
 0x2ab   :  { %1461 = vtanh.f32 %v742_v44  ;;  %v745_v48 = vadd.f32 %v1837_v38, %v744_v47 }
 0x2ac   :  { %1463 = vtanh.f32 %v753_v61 }
 0x2ad   :  { %1465 = vtanh.f32 %v745_v48 }
 0x2af   :  { %v1286_v50 = vpop.f32.mrb[20].mxu0 }
 0x2b0   :  { %v766_v51 = vadd.f32 %v1286_v50, %v1837_v38  ;;  %v757_v40 = vpop.f32.mrb[21].mxu0 }
 0x2b1   :  { %v758_v36 = vadd.f32 %v1837_v38, %v757_v40  ;;  %v1287_v43 = vpop.f32.mrb[22].mxu0 }
 0x2b2   :  { %1467 = vtanh.f32 %v766_v51  ;;  %v769_v49 = vadd.f32 %v1287_v43, %v1837_v38  ;;  %v760_v52 = vpop.f32.mrb[23].mxu0 }
 0x2b3   :  { %v761_v54 = vadd.f32 %v1837_v38, %v760_v52 }
 0x2b4   :  { %v1460_v55 = vpop.eup %1459  ;;  %1469 = vtanh.f32 %v769_v49 }
 0x2b5   :  { %v1462_v56 = vpop.eup %1461  ;;  %1471 = vtanh.f32 %v758_v36  ;;  %v909_v57 = vmul.f32 %v1460_v55, %v1849_v53 }
 0x2b6   :  { %v1464_v58 = vpop.eup %1463  ;;  %1473 = vtanh.f32 %v761_v54  ;;  %v907_v59 = vmul.f32 %v1462_v56, %v1849_v53 }
 0x2b7   :  { %v1466_v60 = vpop.eup %1465  ;;  %943 = vadd.xlane.f32.xlu1 %v909_v57  ;;  %v1290_v62 = vpop.f32.mrb[24].mxu0  ;;  %v910_v3 = vmul.f32 %v1464_v58, %v1849_v53 }
 0x2b8   :  { %v782_v63 = vadd.f32 %v1290_v62, %v1837_v38  ;;  %v773_v0 = vpop.f32.mrb[25].mxu0  ;;  %939 = vadd.xlane.f32.xlu0 %v907_v59  ;;  %v908_v6 = vmul.f32 %v1466_v60, %v1849_v53 }
 0x2b9   :  { %v774_v1 = vadd.f32 %v1837_v38, %v773_v0  ;;  %v1291_v2 = vpop.f32.mrb[26].mxu0 }
 0x2ba   :  { %1475 = vtanh.f32 %v782_v63  ;;  %v785_v4 = vadd.f32 %v1291_v2, %v1837_v38  ;;  %v776_v5 = vpop.f32.mrb[27].mxu0 }
 0x2bb   :  { %v777_v7 = vadd.f32 %v1837_v38, %v776_v5  ;;  %945 = vadd.xlane.f32.xlu1 %v910_v3 }
 0x2bc   :  { %v1468_v8 = vpop.eup %1467  ;;  %1477 = vtanh.f32 %v785_v4  ;;  %941 = vadd.xlane.f32.xlu0 %v908_v6 }
 0x2bd   :  { %1479 = vtanh.f32 %v774_v1  ;;  %v913_v9 = vmul.f32 %v1468_v8, %v1849_v53 }
 0x2be   :  { %v1470_v10 = vpop.eup %1469  ;;  %1481 = vtanh.f32 %v777_v7 }
 0x2bf   :  { %v1472_v11 = vpop.eup %1471  ;;  %v1294_v12 = vpop.f32.mrb[28].mxu0  ;;  %v914_v13 = vmul.f32 %v1470_v10, %v1849_v53 }
 0x2c0   :  { %v1474_v14 = vpop.eup %1473  ;;  %v798_v15 = vadd.f32 %v1294_v12, %v1837_v38  ;;  %v789_v16 = vpop.f32.mrb[29].mxu0  ;;  %951 = vadd.xlane.f32.xlu0 %v913_v9  ;;  %v911_v21 = vmul.f32 %v1472_v11, %v1849_v53 }
 0x2c1   :  { %v790_v17 = vadd.f32 %v1837_v38, %v789_v16  ;;  %953 = vadd.xlane.f32.xlu1 %v914_v13  ;;  %v1295_v18 = vpop.f32.mrb[30].mxu0  ;;  %v912_v23 = vmul.f32 %v1474_v14, %v1849_v53 }
 0x2c2   :  { %1483 = vtanh.f32 %v798_v15  ;;  %v801_v19 = vadd.f32 %v1295_v18, %v1837_v38  ;;  %v792_v20 = vpop.f32.mrb[31].mxu0 }
 0x2c3   :  { %v793_v22 = vadd.f32 %v1837_v38, %v792_v20 }
 0x2c4   :  { %v1476_v24 = vpop.eup %1475  ;;  %1485 = vtanh.f32 %v801_v19  ;;  %947 = vadd.xlane.f32.xlu0 %v911_v21 }
 0x2c5   :  { %1487 = vtanh.f32 %v790_v17  ;;  %949 = vadd.xlane.f32.xlu1 %v912_v23  ;;  %v917_v25 = vmul.f32 %v1476_v24, %v1849_v53 }
 0x2c6   :  { %v1478_v26 = vpop.eup %1477  ;;  %1489 = vtanh.f32 %v793_v22 }
 0x2c7   :  { %v1480_v27 = vpop.eup %1479  ;;  %v1298_v28 = vpop.f32.mrb[32].mxu0  ;;  %v918_v29 = vmul.f32 %v1478_v26, %v1849_v53 }
 0x2c8   :  { %v1482_v30 = vpop.eup %1481  ;;  %v814_v31 = vadd.f32 %v1298_v28, %v1837_v38  ;;  %v805_v32 = vpop.f32.mrb[33].mxu0  ;;  %959 = vadd.xlane.f32.xlu0 %v917_v25  ;;  %v915_v46 = vmul.f32 %v1480_v27, %v1849_v53 }
 0x2c9   :  { %v806_v33 = vadd.f32 %v1837_v38, %v805_v32  ;;  %v1299_v34 = vpop.f32.mrb[34].mxu0  ;;  %961 = vadd.xlane.f32.xlu1 %v918_v29  ;;  %v916_v41 = vmul.f32 %v1482_v30, %v1849_v53 }
 0x2ca   :  { %1491 = vtanh.f32 %v814_v31  ;;  %v817_v35 = vadd.f32 %v1299_v34, %v1837_v38  ;;  %v808_v37 = vpop.f32.mrb[35].mxu0 }
 0x2cb   :  { %v809_v39 = vadd.f32 %v1837_v38, %v808_v37 }
 0x2cc   :  { %v1484_v42 = vpop.eup %1483  ;;  %1493 = vtanh.f32 %v817_v35  ;;  %955 = vadd.xlane.f32.xlu0 %v915_v46 }
 0x2cd   :  { %1495 = vtanh.f32 %v806_v33  ;;  %957 = vadd.xlane.f32.xlu1 %v916_v41  ;;  %v921_v44 = vmul.f32 %v1484_v42, %v1849_v53 }
 0x2ce   :  { %v1486_v45 = vpop.eup %1485  ;;  %1497 = vtanh.f32 %v809_v39 }
 0x2cf   :  { %v1488_v61 = vpop.eup %1487  ;;  %v1302_v47 = vpop.f32.mrb[36].mxu0  ;;  %v922_v48 = vmul.f32 %v1486_v45, %v1849_v53 }
 0x2d0   :  { %v1490_v50 = vpop.eup %1489  ;;  %v830_v51 = vadd.f32 %v1302_v47, %v1837_v38  ;;  %v821_v40 = vpop.f32.mrb[37].mxu0  ;;  %967 = vadd.xlane.f32.xlu0 %v921_v44  ;;  %v919_v54 = vmul.f32 %v1488_v61, %v1849_v53  ;;  %v1908_v44 = vld [vmem:[#allocation2] ss:$0 sm:$0xff] }
 0x2d1   :  { %v822_v36 = vadd.f32 %v1837_v38, %v821_v40  ;;  %v1303_v43 = vpop.f32.mrb[38].mxu0  ;;  %969 = vadd.xlane.f32.xlu1 %v922_v48  ;;  %v920_v56 = vmul.f32 %v1490_v50, %v1849_v53 }
 0x2d2   :  { %1499 = vtanh.f32 %v830_v51  ;;  %v833_v49 = vadd.f32 %v1303_v43, %v1837_v38  ;;  %v824_v52 = vpop.f32.mrb[39].mxu0 }
 0x2d3   :  { %v825_v55 = vadd.f32 %v1837_v38, %v824_v52 }
 0x2d4   :  { %v1492_v57 = vpop.eup %1491  ;;  %1501 = vtanh.f32 %v833_v49  ;;  %963 = vadd.xlane.f32.xlu0 %v919_v54 }
 0x2d5   :  { %1503 = vtanh.f32 %v822_v36  ;;  %965 = vadd.xlane.f32.xlu1 %v920_v56  ;;  %v925_v58 = vmul.f32 %v1492_v57, %v1849_v53 }
 0x2d6   :  { %v1494_v59 = vpop.eup %1493  ;;  %1505 = vtanh.f32 %v825_v55 }
 0x2d7   :  { %v1496_v60 = vpop.eup %1495  ;;  %v1306_v62 = vpop.f32.mrb[40].mxu0  ;;  %v926_v63 = vmul.f32 %v1494_v59, %v1849_v53 }
 0x2d8   :  { %v1498_v0 = vpop.eup %1497  ;;  %v846_v1 = vadd.f32 %v1306_v62, %v1837_v38  ;;  %v837_v2 = vpop.f32.mrb[41].mxu0  ;;  %975 = vadd.xlane.f32.xlu0 %v925_v58  ;;  %v923_v7 = vmul.f32 %v1496_v60, %v1849_v53 }
 0x2d9   :  { %v838_v3 = vadd.f32 %v1837_v38, %v837_v2  ;;  %v1307_v4 = vpop.f32.mrb[42].mxu0  ;;  %977 = vadd.xlane.f32.xlu1 %v926_v63  ;;  %v924_v9 = vmul.f32 %v1498_v0, %v1849_v53 }
 0x2da   :  { %1507 = vtanh.f32 %v846_v1  ;;  %v849_v5 = vadd.f32 %v1307_v4, %v1837_v38  ;;  %v840_v6 = vpop.f32.mrb[43].mxu0 }
 0x2db   :  { %v841_v8 = vadd.f32 %v1837_v38, %v840_v6 }
 0x2dc   :  { %v1500_v10 = vpop.eup %1499  ;;  %1509 = vtanh.f32 %v849_v5  ;;  %971 = vadd.xlane.f32.xlu0 %v923_v7 }
 0x2dd   :  { %1511 = vtanh.f32 %v838_v3  ;;  %973 = vadd.xlane.f32.xlu1 %v924_v9  ;;  %v929_v11 = vmul.f32 %v1500_v10, %v1849_v53 }
 0x2de   :  { %v1502_v12 = vpop.eup %1501  ;;  %1513 = vtanh.f32 %v841_v8 }
 0x2df   :  { %v1504_v13 = vpop.eup %1503  ;;  %v1310_v14 = vpop.f32.mrb[44].mxu0  ;;  %v930_v15 = vmul.f32 %v1502_v12, %v1849_v53 }
 0x2e0   :  { %v1506_v16 = vpop.eup %1505  ;;  %v862_v17 = vadd.f32 %v1310_v14, %v1837_v38  ;;  %v853_v18 = vpop.f32.mrb[45].mxu0  ;;  %983 = vadd.xlane.f32.xlu0 %v929_v11  ;;  %v927_v22 = vmul.f32 %v1504_v13, %v1849_v53 }
 0x2e1   :  { %v854_v19 = vadd.f32 %v1837_v38, %v853_v18  ;;  %v1311_v20 = vpop.f32.mrb[46].mxu0  ;;  %985 = vadd.xlane.f32.xlu1 %v930_v15  ;;  %v928_v25 = vmul.f32 %v1506_v16, %v1849_v53 }
 0x2e2   :  { %v856_v21 = vpop.f32.mrb[47].mxu0  ;;  %v865_v23 = vadd.f32 %v1311_v20, %v1837_v38 }
 0x2e3   :  { %1515 = vtanh.f32 %v854_v19  ;;  %v857_v24 = vadd.f32 %v1837_v38, %v856_v21 }
 0x2e4   :  { %v1508_v26 = vpop.eup %1507  ;;  %1517 = vtanh.f32 %v862_v17  ;;  %979 = vadd.xlane.f32.xlu0 %v927_v22 }
 0x2e5   :  { %1519 = vtanh.f32 %v857_v24  ;;  %981 = vadd.xlane.f32.xlu1 %v928_v25  ;;  %v933_v27 = vmul.f32 %v1508_v26, %v1849_v53 }
 0x2e6   :  { %v1510_v28 = vpop.eup %1509  ;;  %1521 = vtanh.f32 %v865_v23 }
 0x2e7   :  { %v1512_v29 = vpop.eup %1511  ;;  %v934_v30 = vmul.f32 %v1510_v28, %v1849_v53 }
 0x2e8   :  { %v1514_v31 = vpop.eup %1513  ;;  %991 = vadd.xlane.f32.xlu0 %v933_v27  ;;  %v931_v32 = vmul.f32 %v1512_v29, %v1849_v53 }
 0x2e9   :  { %993 = vadd.xlane.f32.xlu1 %v934_v30  ;;  %v932_v38 = vmul.f32 %v1514_v31, %v1849_v53 }
 0x2ec   :  { %987 = vadd.xlane.f32.xlu0 %v931_v32 }
 0x2ed   :  { %v1516_v33 = vpop.eup %1515  ;;  %989 = vadd.xlane.f32.xlu1 %v932_v38 }
 0x2ee   :  { %v1518_v34 = vpop.eup %1517  ;;  %v935_v35 = vmul.f32 %v1516_v33, %v1849_v53 }
 0x2ef   :  { %v1520_v37 = vpop.eup %1519  ;;  %v937_v41 = vmul.f32 %v1518_v34, %v1849_v53 }
 0x2f0   :  { %995 = vadd.xlane.f32.xlu0 %v935_v35  ;;  %v936_v46 = vmul.f32 %v1520_v37, %v1849_v53  ;;  %v1522_v39 = vpop.eup %1521 }
 0x2f1   :  { %v938_v42 = vmul.f32 %v1522_v39, %v1849_v53 }
 0x2f2   :  { %997 = vadd.xlane.f32.xlu1 %v936_v46 }
 0x2f4   :  { %999 = vadd.xlane.f32.xlu0 %v937_v41 }
 0x2f6   :  { %1001 = vadd.xlane.f32.xlu1 %v938_v42 }
 0x344   :  { %v944_v45 = vpop.xlane.xlu1 %943 }
 0x345   :  { %v1012_v61 = vadd.f32 %v1908_v44, %v944_v45  ;;  %v940_v47 = vpop.xlane.xlu0 %939 }
 0x346   :  { %v1010_v48 = vadd.f32 %v1908_v44, %v940_v47 }
 0x347   :  { %1045 = vst.msk [vmem:[%s2079_s9 + $0x10] sm:$0xff] %vm1042_vm1, %v1012_v61 }
 0x348   :  { %1043 = vst.msk [vmem:[%s2079_s9] sm:$0xff] %vm1042_vm1, %v1010_v48  ;;  %v946_v53 = vpop.xlane.xlu1 %945 }
 0x349   :  { %v1013_v50 = vadd.f32 %v1908_v44, %v946_v53  ;;  %v942_v51 = vpop.xlane.xlu0 %941 }
 0x34a   :  { %v1011_v40 = vadd.f32 %v1908_v44, %v942_v51 }
 0x34b   :  { %1046 = vst.msk [vmem:[%s2079_s9 + $0x18] sm:$0xff] %vm1042_vm1, %v1013_v50 }
 0x34c   :  { %1044 = vst.msk [vmem:[%s2079_s9 + $0x8] sm:$0xff] %vm1042_vm1, %v1011_v40 }
 0x34d   :  { %v952_v36 = vpop.xlane.xlu0 %951 }
 0x34e   :  { %v1016_v43 = vadd.f32 %v1908_v44, %v952_v36  ;;  %v954_v49 = vpop.xlane.xlu1 %953 }
 0x34f   :  { %v1017_v52 = vadd.f32 %v1908_v44, %v954_v49 }
 0x350   :  { %1049 = vst.msk [vmem:[%s2079_s9 + $0x30] sm:$0xff] %vm1042_vm1, %v1016_v43 }
 0x351   :  { %1050 = vst.msk [vmem:[%s2079_s9 + $0x38] sm:$0xff] %vm1042_vm1, %v1017_v52  ;;  %v948_v54 = vpop.xlane.xlu0 %947 }
 0x352   :  { %v1014_v55 = vadd.f32 %v1908_v44, %v948_v54  ;;  %v950_v56 = vpop.xlane.xlu1 %949 }
 0x353   :  { %v1015_v57 = vadd.f32 %v1908_v44, %v950_v56 }
 0x354   :  { %1047 = vst.msk [vmem:[%s2079_s9 + $0x20] sm:$0xff] %vm1042_vm1, %v1014_v55 }
 0x355   :  { %1048 = vst.msk [vmem:[%s2079_s9 + $0x28] sm:$0xff] %vm1042_vm1, %v1015_v57  ;;  %v960_v58 = vpop.xlane.xlu0 %959 }
 0x356   :  { %v1020_v59 = vadd.f32 %v1908_v44, %v960_v58  ;;  %v962_v60 = vpop.xlane.xlu1 %961 }
 0x357   :  { %v1021_v62 = vadd.f32 %v1908_v44, %v962_v60 }
 0x358   :  { %1053 = vst.msk [vmem:[%s2079_s9 + $0x50] sm:$0xff] %vm1042_vm1, %v1020_v59 }
 0x359   :  { %1054 = vst.msk [vmem:[%s2079_s9 + $0x58] sm:$0xff] %vm1042_vm1, %v1021_v62  ;;  %v956_v63 = vpop.xlane.xlu0 %955 }
 0x35a   :  { %v1018_v0 = vadd.f32 %v1908_v44, %v956_v63  ;;  %v958_v1 = vpop.xlane.xlu1 %957 }
 0x35b   :  { %v1019_v2 = vadd.f32 %v1908_v44, %v958_v1 }
 0x35c   :  { %1051 = vst.msk [vmem:[%s2079_s9 + $0x40] sm:$0xff] %vm1042_vm1, %v1018_v0 }
 0x35d   :  { %1052 = vst.msk [vmem:[%s2079_s9 + $0x48] sm:$0xff] %vm1042_vm1, %v1019_v2  ;;  %v968_v3 = vpop.xlane.xlu0 %967 }
 0x35e   :  { %v1024_v4 = vadd.f32 %v1908_v44, %v968_v3  ;;  %v970_v5 = vpop.xlane.xlu1 %969 }
 0x35f   :  { %v1025_v6 = vadd.f32 %v1908_v44, %v970_v5 }
 0x360   :  { %1057 = vst.msk [vmem:[%s2079_s9 + $0x70] sm:$0xff] %vm1042_vm1, %v1024_v4 }
 0x361   :  { %1058 = vst.msk [vmem:[%s2079_s9 + $0x78] sm:$0xff] %vm1042_vm1, %v1025_v6  ;;  %v964_v7 = vpop.xlane.xlu0 %963 }
 0x362   :  { %v1022_v8 = vadd.f32 %v1908_v44, %v964_v7  ;;  %v966_v9 = vpop.xlane.xlu1 %965 }
 0x363   :  { %v1023_v10 = vadd.f32 %v1908_v44, %v966_v9 }
 0x364   :  { %1055 = vst.msk [vmem:[%s2079_s9 + $0x60] sm:$0xff] %vm1042_vm1, %v1022_v8 }
 0x365   :  { %1056 = vst.msk [vmem:[%s2079_s9 + $0x68] sm:$0xff] %vm1042_vm1, %v1023_v10  ;;  %v976_v11 = vpop.xlane.xlu0 %975 }
 0x366   :  { %v1028_v12 = vadd.f32 %v1908_v44, %v976_v11  ;;  %v978_v13 = vpop.xlane.xlu1 %977 }
 0x367   :  { %v1029_v14 = vadd.f32 %v1908_v44, %v978_v13 }
 0x368   :  { %1061 = vst.msk [vmem:[%s2079_s9 + $0x90] sm:$0xff] %vm1042_vm1, %v1028_v12 }
 0x369   :  { %1062 = vst.msk [vmem:[%s2079_s9 + $0x98] sm:$0xff] %vm1042_vm1, %v1029_v14  ;;  %v972_v15 = vpop.xlane.xlu0 %971 }
 0x36a   :  { %v1026_v16 = vadd.f32 %v1908_v44, %v972_v15  ;;  %v974_v17 = vpop.xlane.xlu1 %973 }
 0x36b   :  { %v1027_v18 = vadd.f32 %v1908_v44, %v974_v17 }
 0x36c   :  { %1059 = vst.msk [vmem:[%s2079_s9 + $0x80] sm:$0xff] %vm1042_vm1, %v1026_v16 }
 0x36d   :  { %1060 = vst.msk [vmem:[%s2079_s9 + $0x88] sm:$0xff] %vm1042_vm1, %v1027_v18  ;;  %v984_v19 = vpop.xlane.xlu0 %983 }
 0x36e   :  { %v1032_v20 = vadd.f32 %v1908_v44, %v984_v19  ;;  %v986_v21 = vpop.xlane.xlu1 %985 }
 0x36f   :  { %v1033_v22 = vadd.f32 %v1908_v44, %v986_v21 }
 0x370   :  { %1065 = vst.msk [vmem:[%s2079_s9 + $0xb0] sm:$0xff] %vm1042_vm1, %v1032_v20 }
 0x371   :  { %1066 = vst.msk [vmem:[%s2079_s9 + $0xb8] sm:$0xff] %vm1042_vm1, %v1033_v22  ;;  %v980_v23 = vpop.xlane.xlu0 %979 }
 0x372   :  { %v1030_v24 = vadd.f32 %v1908_v44, %v980_v23  ;;  %v982_v25 = vpop.xlane.xlu1 %981 }
 0x373   :  { %v1031_v26 = vadd.f32 %v1908_v44, %v982_v25 }
 0x374   :  { %1063 = vst.msk [vmem:[%s2079_s9 + $0xa0] sm:$0xff] %vm1042_vm1, %v1030_v24 }
 0x375   :  { %1064 = vst.msk [vmem:[%s2079_s9 + $0xa8] sm:$0xff] %vm1042_vm1, %v1031_v26  ;;  %v992_v27 = vpop.xlane.xlu0 %991 }
 0x376   :  { %v1036_v28 = vadd.f32 %v1908_v44, %v992_v27  ;;  %v994_v29 = vpop.xlane.xlu1 %993 }
 0x377   :  { %v1037_v30 = vadd.f32 %v1908_v44, %v994_v29 }
 0x378   :  { %1069 = vst.msk [vmem:[%s2079_s9 + $0xd0] sm:$0xff] %vm1042_vm1, %v1036_v28 }
 0x379   :  { %1070 = vst.msk [vmem:[%s2079_s9 + $0xd8] sm:$0xff] %vm1042_vm1, %v1037_v30  ;;  %v988_v31 = vpop.xlane.xlu0 %987 }
 0x37a   :  { %v1034_v32 = vadd.f32 %v1908_v44, %v988_v31  ;;  %v990_v38 = vpop.xlane.xlu1 %989 }
 0x37b   :  { %v1035_v33 = vadd.f32 %v1908_v44, %v990_v38 }
 0x37c   :  { %1067 = vst.msk [vmem:[%s2079_s9 + $0xc0] sm:$0xff] %vm1042_vm1, %v1034_v32 }
 0x37d   :  { %1068 = vst.msk [vmem:[%s2079_s9 + $0xc8] sm:$0xff] %vm1042_vm1, %v1035_v33  ;;  %v996_v34 = vpop.xlane.xlu0 %995 }
 0x37e   :  { %v1038_v35 = vadd.f32 %v1908_v44, %v996_v34 }
 0x37f   :  { %v998_v37 = vpop.xlane.xlu1 %997 }
 0x380   :  { %1071 = vst.msk [vmem:[%s2079_s9 + $0xe0] sm:$0xff] %vm1042_vm1, %v1038_v35  ;;  %v1039_v46 = vadd.f32 %v1908_v44, %v998_v37 }
 0x381   :  { %v1000_v39 = vpop.xlane.xlu0 %999 }
 0x382   :  { %1072 = vst.msk [vmem:[%s2079_s9 + $0xe8] sm:$0xff] %vm1042_vm1, %v1039_v46  ;;  %v1040_v41 = vadd.f32 %v1908_v44, %v1000_v39 }
 0x383   :  { %v1002_v42 = vpop.xlane.xlu1 %1001 }
 0x384   :  { %1073 = vst.msk [vmem:[%s2079_s9 + $0xf0] sm:$0xff] %vm1042_vm1, %v1040_v41  ;;  %v1041_v45 = vadd.f32 %v1908_v44, %v1002_v42 }
 0x386   :  { %1074 = vst.msk [vmem:[%s2079_s9 + $0xf8] sm:$0xff] %vm1042_vm1, %v1041_v45 }

</bundles_post_ra>
